<compile_context>
chip_gen: v6e
topology: v6e:2x2x1
jax: 0.10.0
libtpu: 0.0.40
codegen_flags: <defaults>
</compile_context>

<pallas_src>
import jax
import jax.numpy as jnp
from jax.experimental import pallas as pl
from jax.experimental.pallas import tpu as pltpu


def lstm_fc_kernel(x_ref, w_ih_t_ref, w_hh_t_ref, b_ref, fc_w_t_ref, fc_b_ref,
                   out_ref):
    """Full LSTM recurrence + final Linear; everything resident in VMEM.

    x_ref:      (S, B, I)   time-major, batch padded to a sublane multiple
    w_ih_t_ref: (I, 4H)     gate order [i, f, o, g]
    w_hh_t_ref: (H, 4H)     gate order [i, f, o, g]
    b_ref:      (1, 4H)     b_ih + b_hh, gate order [i, f, o, g]
    fc_w_t_ref: (H, O_pad)
    fc_b_ref:   (1, O_pad)
    out_ref:    (B, O_pad)
    """
    S, B, _ = x_ref.shape
    H = w_hh_t_ref.shape[0]

    w_hh_t = w_hh_t_ref[...]                       # (H, 4H)

    # Hoisted input projection for ALL timesteps: one batched MXU pass +
    # a single bias broadcast, removed from the serial dependency chain.
    xg = jnp.einsum("sbi,ig->sbg", x_ref[...], w_ih_t_ref[...],
                    preferred_element_type=jnp.float32) + b_ref[...]  # (S,B,4H)

    h = jnp.zeros((B, H), jnp.float32)
    c = jnp.zeros((B, H), jnp.float32)

    # Static unroll (S is a compile-time constant; no scf.for overhead).
    for t in range(S):
        gates = xg[t] + jnp.dot(h, w_hh_t,
                                preferred_element_type=jnp.float32)   # (B, 4H)
        sig = jax.nn.sigmoid(gates[:, :3 * H])     # contiguous [i | f | o]
        g_g = jnp.tanh(gates[:, 3 * H:])           # [g]
        i_g = sig[:, :H]
        f_g = sig[:, H:2 * H]
        o_g = sig[:, 2 * H:3 * H]
        c = f_g * c + i_g * g_g
        h = o_g * jnp.tanh(c)

    # Final fc on last-timestep hidden state; lane-dense (B, O_pad) store.
    out_ref[...] = (jnp.dot(h, fc_w_t_ref[...],
                            preferred_element_type=jnp.float32)
                    + fc_b_ref[...])


def lstm_model_forward(x, params):
    """x: (B, S, I) batch-first, like the PyTorch module. Returns (B, O)."""
    w_ih, w_hh, b_ih, b_hh, fc_w, fc_b = params
    B, S, I = x.shape
    H = w_hh.shape[1]
    O = fc_w.shape[0]

    B_pad = max(8, ((B + 7) // 8) * 8)         # sublane-dense batch
    O_pad = max(128, ((O + 127) // 128) * 128)  # lane-dense fc output

    # Reorder gate blocks from PyTorch's [i, f, g, o] to [i, f, o, g] so the
    # kernel's sigmoid covers one contiguous 3H slice (pure wrapper shuffle).
    perm = jnp.concatenate([
        jnp.arange(0, H), jnp.arange(H, 2 * H),
        jnp.arange(3 * H, 4 * H), jnp.arange(2 * H, 3 * H)])
    w_ih_r = w_ih[perm]                        # (4H, I)
    w_hh_r = w_hh[perm]                        # (4H, H)
    b_r = (b_ih + b_hh)[perm]                  # (4H,)

    # Time-major layout + pad batch with zeros (sliced off after the call).
    x_tm = jnp.transpose(x, (1, 0, 2)).astype(jnp.float32)          # (S, B, I)
    x_tm = jnp.pad(x_tm, ((0, 0), (0, B_pad - B), (0, 0)))          # (S, Bp, I)

    w_ih_t = w_ih_r.T.astype(jnp.float32)                           # (I, 4H)
    w_hh_t = w_hh_r.T.astype(jnp.float32)                           # (H, 4H)
    b = b_r.reshape(1, 4 * H).astype(jnp.float32)                   # (1, 4H)

    fc_w_p = jnp.pad(fc_w.astype(jnp.float32), ((0, O_pad - O), (0, 0)))
    fc_w_t = fc_w_p.T                                               # (H, O_pad)
    fc_b_p = jnp.pad(fc_b.astype(jnp.float32),
                     (0, O_pad - O)).reshape(1, O_pad)              # (1, O_pad)

    vmem_spec = pl.BlockSpec(memory_space=pltpu.MemorySpace.VMEM)
    cost = pl.CostEstimate(
        flops=2 * S * B_pad * 4 * H * (I + H) + 2 * B_pad * H * O_pad,
        transcendentals=S * B_pad * 5 * H,
        bytes_accessed=4 * (x_tm.size + w_ih_t.size + w_hh_t.size + b.size
                            + fc_w_t.size + fc_b_p.size + B_pad * O_pad),
    )

    # TODO(synk): if shapes grow (large S*B*I or v7x's 64 MiB VMEM), switch to
    # a gridded layout streaming x over S with h/c in VMEM scratch and a
    # parallel batch grid axis; unnecessary at these sizes.
    out = pl.pallas_call(
        lstm_fc_kernel,
        out_shape=jax.ShapeDtypeStruct((B_pad, O_pad), jnp.float32),
        in_specs=[vmem_spec] * 6,
        out_specs=vmem_spec,
        cost_estimate=cost,
    )(x_tm, w_ih_t, w_hh_t, b, fc_w_t, fc_b_p)

    return out[:B, :O]


def lstm_model_ref(x, params):
    """Pure-JAX reference mirroring torch.nn.LSTM + Linear semantics."""
    w_ih, w_hh, b_ih, b_hh, fc_w, fc_b = params
    B, S, _ = x.shape
    H = w_hh.shape[1]
    h = jnp.zeros((B, H), jnp.float32)
    c = jnp.zeros((B, H), jnp.float32)
    for t in range(S):
        gates = x[:, t, :] @ w_ih.T + h @ w_hh.T + b_ih + b_hh
        i_g = jax.nn.sigmoid(gates[:, 0:H])
        f_g = jax.nn.sigmoid(gates[:, H:2 * H])
        g_g = jnp.tanh(gates[:, 2 * H:3 * H])
        o_g = jax.nn.sigmoid(gates[:, 3 * H:4 * H])
        c = f_g * c + i_g * g_g
        h = o_g * jnp.tanh(c)
    return h @ fc_w.T + fc_b


def init_params(key, input_size, hidden_size, output_size):
    """Deterministic init matching PyTorch shapes (uniform +-1/sqrt(H))."""
    ks = jax.random.split(key, 6)
    s = 1.0 / jnp.sqrt(hidden_size)
    w_ih = jax.random.uniform(ks[0], (4 * hidden_size, input_size), jnp.float32, -s, s)
    w_hh = jax.random.uniform(ks[1], (4 * hidden_size, hidden_size), jnp.float32, -s, s)
    b_ih = jax.random.uniform(ks[2], (4 * hidden_size,), jnp.float32, -s, s)
    b_hh = jax.random.uniform(ks[3], (4 * hidden_size,), jnp.float32, -s, s)
    fc_w = jax.random.uniform(ks[4], (output_size, hidden_size), jnp.float32, -s, s)
    fc_b = jax.random.uniform(ks[5], (output_size,), jnp.float32, -s, s)
    return (w_ih, w_hh, b_ih, b_hh, fc_w, fc_b)


if __name__ == "__main__":
    # Small shapes consistent with the module: batch=2, seq=8, input=4,
    # hidden=32, output=5.
    B, S, I, H, O = 2, 8, 4, 32, 5

    key = jax.random.PRNGKey(0)
    k_x, k_p = jax.random.split(key)
    x = jax.random.normal(k_x, (B, S, I), jnp.float32)
    params = init_params(k_p, I, H, O)

    out = lstm_model_forward(x, params)
    out = jax.block_until_ready(out)

    ref = lstm_model_ref(x, params)
    assert out.shape == (B, O)
    assert jnp.allclose(out, ref, atol=1e-5, rtol=1e-5), (out, ref)

    print("KERNEL_OK")
</pallas_src>

<mosaic_0001>
module attributes {stable_mosaic.version = 11 : i64} {
  func.func @lstm_fc_kernel(%arg0: memref<8x8x4xf32, #tpu.memory_space<vmem>>, %arg1: memref<4x128xf32, #tpu.memory_space<vmem>>, %arg2: memref<32x128xf32, #tpu.memory_space<vmem>>, %arg3: memref<1x128xf32, #tpu.memory_space<vmem>>, %arg4: memref<32x128xf32, #tpu.memory_space<vmem>>, %arg5: memref<1x128xf32, #tpu.memory_space<vmem>>, %arg6: memref<8x128xf32, #tpu.memory_space<vmem>>) attributes {dimension_semantics = [], scalar_prefetch = 0 : i64, scratch_operands = 0 : i64, tpu.core_type = #tpu.core_type<tc>} {
    %c0 = arith.constant 0 : index
    %c0_0 = arith.constant 0 : index
    %0 = vector.load %arg2[%c0, %c0_0] : memref<32x128xf32, #tpu.memory_space<vmem>>, vector<32x128xf32>
    %c0_1 = arith.constant 0 : index
    %c0_2 = arith.constant 0 : index
    %c0_3 = arith.constant 0 : index
    %1 = vector.load %arg0[%c0_1, %c0_2, %c0_3] : memref<8x8x4xf32, #tpu.memory_space<vmem>>, vector<8x8x4xf32>
    %c0_4 = arith.constant 0 : index
    %c0_5 = arith.constant 0 : index
    %2 = vector.load %arg1[%c0_4, %c0_5] : memref<4x128xf32, #tpu.memory_space<vmem>>, vector<4x128xf32>
    "tpu.trace_start"() <{level = 10 : i32, message = "sbi,ig->sbg"}> : () -> ()
    %cst = arith.constant dense<0.000000e+00> : vector<8x8x128xf32>
    %3 = tpu.matmul %1, %2, %cst {dimension_numbers = #tpu.dot_dimension_numbers<[2], [0], [0, 1], [1], [0, 0, 0, 1, 1, 1], [], []>} : vector<8x8x4xf32>, vector<4x128xf32>, vector<8x8x128xf32> -> vector<8x8x128xf32>
    "tpu.trace_stop"() : () -> ()
    %c0_6 = arith.constant 0 : index
    %c0_7 = arith.constant 0 : index
    %4 = vector.load %arg3[%c0_6, %c0_7] : memref<1x128xf32, #tpu.memory_space<vmem>>, vector<1x128xf32>
    %5 = vector.shape_cast %4 : vector<1x128xf32> to vector<1x1x128xf32>
    %6 = vector.broadcast %5 : vector<1x1x128xf32> to vector<8x8x128xf32>
    %7 = arith.addf %3, %6 : vector<8x8x128xf32>
    %cst_8 = arith.constant 0.000000e+00 : f32
    %8 = vector.broadcast %cst_8 : f32 to vector<8x32xf32>
    %cst_9 = arith.constant 0.000000e+00 : f32
    %9 = vector.broadcast %cst_9 : f32 to vector<8x32xf32>
    %10 = vector.extract_strided_slice %7 {offsets = [0, 0, 0], sizes = [1, 8, 128], strides = [1, 1, 1]} : vector<8x8x128xf32> to vector<1x8x128xf32>
    %11 = vector.shape_cast %10 : vector<1x8x128xf32> to vector<8x128xf32>
    %cst_10 = arith.constant dense<0.000000e+00> : vector<8x128xf32>
    %12 = tpu.matmul %8, %0, %cst_10 {dimension_numbers = #tpu.dot_dimension_numbers<[1], [0], [0], [1], [0, 0, 1, 1], [], []>} : vector<8x32xf32>, vector<32x128xf32>, vector<8x128xf32> -> vector<8x128xf32>
    %13 = arith.addf %11, %12 : vector<8x128xf32>
    %14 = vector.extract_strided_slice %13 {offsets = [0, 0], sizes = [8, 96], strides = [1, 1]} : vector<8x128xf32> to vector<8x96xf32>
    %15 = arith.negf %14 : vector<8x96xf32>
    %16 = math.exp %15 : vector<8x96xf32>
    %cst_11 = arith.constant 1.000000e+00 : f32
    %17 = vector.broadcast %cst_11 : f32 to vector<8x96xf32>
    %18 = arith.addf %17, %16 : vector<8x96xf32>
    %19 = arith.divf %17, %18 : vector<8x96xf32>
    %20 = vector.extract_strided_slice %13 {offsets = [0, 96], sizes = [8, 32], strides = [1, 1]} : vector<8x128xf32> to vector<8x32xf32>
    %21 = math.tanh %20 : vector<8x32xf32>
    %22 = vector.extract_strided_slice %19 {offsets = [0, 0], sizes = [8, 32], strides = [1, 1]} : vector<8x96xf32> to vector<8x32xf32>
    %23 = vector.extract_strided_slice %19 {offsets = [0, 32], sizes = [8, 32], strides = [1, 1]} : vector<8x96xf32> to vector<8x32xf32>
    %24 = vector.extract_strided_slice %19 {offsets = [0, 64], sizes = [8, 32], strides = [1, 1]} : vector<8x96xf32> to vector<8x32xf32>
    %25 = arith.mulf %23, %9 : vector<8x32xf32>
    %26 = arith.mulf %22, %21 : vector<8x32xf32>
    %27 = arith.addf %25, %26 : vector<8x32xf32>
    %28 = math.tanh %27 : vector<8x32xf32>
    %29 = arith.mulf %24, %28 : vector<8x32xf32>
    %30 = vector.extract_strided_slice %7 {offsets = [1, 0, 0], sizes = [1, 8, 128], strides = [1, 1, 1]} : vector<8x8x128xf32> to vector<1x8x128xf32>
    %31 = vector.shape_cast %30 : vector<1x8x128xf32> to vector<8x128xf32>
    %cst_12 = arith.constant dense<0.000000e+00> : vector<8x128xf32>
    %32 = tpu.matmul %29, %0, %cst_12 {dimension_numbers = #tpu.dot_dimension_numbers<[1], [0], [0], [1], [0, 0, 1, 1], [], []>} : vector<8x32xf32>, vector<32x128xf32>, vector<8x128xf32> -> vector<8x128xf32>
    %33 = arith.addf %31, %32 : vector<8x128xf32>
    %34 = vector.extract_strided_slice %33 {offsets = [0, 0], sizes = [8, 96], strides = [1, 1]} : vector<8x128xf32> to vector<8x96xf32>
    %35 = arith.negf %34 : vector<8x96xf32>
    %36 = math.exp %35 : vector<8x96xf32>
    %cst_13 = arith.constant 1.000000e+00 : f32
    %37 = vector.broadcast %cst_13 : f32 to vector<8x96xf32>
    %38 = arith.addf %37, %36 : vector<8x96xf32>
    %39 = arith.divf %37, %38 : vector<8x96xf32>
    %40 = vector.extract_strided_slice %33 {offsets = [0, 96], sizes = [8, 32], strides = [1, 1]} : vector<8x128xf32> to vector<8x32xf32>
    %41 = math.tanh %40 : vector<8x32xf32>
    %42 = vector.extract_strided_slice %39 {offsets = [0, 0], sizes = [8, 32], strides = [1, 1]} : vector<8x96xf32> to vector<8x32xf32>
    %43 = vector.extract_strided_slice %39 {offsets = [0, 32], sizes = [8, 32], strides = [1, 1]} : vector<8x96xf32> to vector<8x32xf32>
    %44 = vector.extract_strided_slice %39 {offsets = [0, 64], sizes = [8, 32], strides = [1, 1]} : vector<8x96xf32> to vector<8x32xf32>
    %45 = arith.mulf %43, %27 : vector<8x32xf32>
    %46 = arith.mulf %42, %41 : vector<8x32xf32>
    %47 = arith.addf %45, %46 : vector<8x32xf32>
    %48 = math.tanh %47 : vector<8x32xf32>
    %49 = arith.mulf %44, %48 : vector<8x32xf32>
    %50 = vector.extract_strided_slice %7 {offsets = [2, 0, 0], sizes = [1, 8, 128], strides = [1, 1, 1]} : vector<8x8x128xf32> to vector<1x8x128xf32>
    %51 = vector.shape_cast %50 : vector<1x8x128xf32> to vector<8x128xf32>
    %cst_14 = arith.constant dense<0.000000e+00> : vector<8x128xf32>
    %52 = tpu.matmul %49, %0, %cst_14 {dimension_numbers = #tpu.dot_dimension_numbers<[1], [0], [0], [1], [0, 0, 1, 1], [], []>} : vector<8x32xf32>, vector<32x128xf32>, vector<8x128xf32> -> vector<8x128xf32>
    %53 = arith.addf %51, %52 : vector<8x128xf32>
    %54 = vector.extract_strided_slice %53 {offsets = [0, 0], sizes = [8, 96], strides = [1, 1]} : vector<8x128xf32> to vector<8x96xf32>
    %55 = arith.negf %54 : vector<8x96xf32>
    %56 = math.exp %55 : vector<8x96xf32>
    %cst_15 = arith.constant 1.000000e+00 : f32
    %57 = vector.broadcast %cst_15 : f32 to vector<8x96xf32>
    %58 = arith.addf %57, %56 : vector<8x96xf32>
    %59 = arith.divf %57, %58 : vector<8x96xf32>
    %60 = vector.extract_strided_slice %53 {offsets = [0, 96], sizes = [8, 32], strides = [1, 1]} : vector<8x128xf32> to vector<8x32xf32>
    %61 = math.tanh %60 : vector<8x32xf32>
    %62 = vector.extract_strided_slice %59 {offsets = [0, 0], sizes = [8, 32], strides = [1, 1]} : vector<8x96xf32> to vector<8x32xf32>
    %63 = vector.extract_strided_slice %59 {offsets = [0, 32], sizes = [8, 32], strides = [1, 1]} : vector<8x96xf32> to vector<8x32xf32>
    %64 = vector.extract_strided_slice %59 {offsets = [0, 64], sizes = [8, 32], strides = [1, 1]} : vector<8x96xf32> to vector<8x32xf32>
    %65 = arith.mulf %63, %47 : vector<8x32xf32>
    %66 = arith.mulf %62, %61 : vector<8x32xf32>
    %67 = arith.addf %65, %66 : vector<8x32xf32>
    %68 = math.tanh %67 : vector<8x32xf32>
    %69 = arith.mulf %64, %68 : vector<8x32xf32>
    %70 = vector.extract_strided_slice %7 {offsets = [3, 0, 0], sizes = [1, 8, 128], strides = [1, 1, 1]} : vector<8x8x128xf32> to vector<1x8x128xf32>
    %71 = vector.shape_cast %70 : vector<1x8x128xf32> to vector<8x128xf32>
    %cst_16 = arith.constant dense<0.000000e+00> : vector<8x128xf32>
    %72 = tpu.matmul %69, %0, %cst_16 {dimension_numbers = #tpu.dot_dimension_numbers<[1], [0], [0], [1], [0, 0, 1, 1], [], []>} : vector<8x32xf32>, vector<32x128xf32>, vector<8x128xf32> -> vector<8x128xf32>
    %73 = arith.addf %71, %72 : vector<8x128xf32>
    %74 = vector.extract_strided_slice %73 {offsets = [0, 0], sizes = [8, 96], strides = [1, 1]} : vector<8x128xf32> to vector<8x96xf32>
    %75 = arith.negf %74 : vector<8x96xf32>
    %76 = math.exp %75 : vector<8x96xf32>
    %cst_17 = arith.constant 1.000000e+00 : f32
    %77 = vector.broadcast %cst_17 : f32 to vector<8x96xf32>
    %78 = arith.addf %77, %76 : vector<8x96xf32>
    %79 = arith.divf %77, %78 : vector<8x96xf32>
    %80 = vector.extract_strided_slice %73 {offsets = [0, 96], sizes = [8, 32], strides = [1, 1]} : vector<8x128xf32> to vector<8x32xf32>
    %81 = math.tanh %80 : vector<8x32xf32>
    %82 = vector.extract_strided_slice %79 {offsets = [0, 0], sizes = [8, 32], strides = [1, 1]} : vector<8x96xf32> to vector<8x32xf32>
    %83 = vector.extract_strided_slice %79 {offsets = [0, 32], sizes = [8, 32], strides = [1, 1]} : vector<8x96xf32> to vector<8x32xf32>
    %84 = vector.extract_strided_slice %79 {offsets = [0, 64], sizes = [8, 32], strides = [1, 1]} : vector<8x96xf32> to vector<8x32xf32>
    %85 = arith.mulf %83, %67 : vector<8x32xf32>
    %86 = arith.mulf %82, %81 : vector<8x32xf32>
    %87 = arith.addf %85, %86 : vector<8x32xf32>
    %88 = math.tanh %87 : vector<8x32xf32>
    %89 = arith.mulf %84, %88 : vector<8x32xf32>
    %90 = vector.extract_strided_slice %7 {offsets = [4, 0, 0], sizes = [1, 8, 128], strides = [1, 1, 1]} : vector<8x8x128xf32> to vector<1x8x128xf32>
    %91 = vector.shape_cast %90 : vector<1x8x128xf32> to vector<8x128xf32>
    %cst_18 = arith.constant dense<0.000000e+00> : vector<8x128xf32>
    %92 = tpu.matmul %89, %0, %cst_18 {dimension_numbers = #tpu.dot_dimension_numbers<[1], [0], [0], [1], [0, 0, 1, 1], [], []>} : vector<8x32xf32>, vector<32x128xf32>, vector<8x128xf32> -> vector<8x128xf32>
    %93 = arith.addf %91, %92 : vector<8x128xf32>
    %94 = vector.extract_strided_slice %93 {offsets = [0, 0], sizes = [8, 96], strides = [1, 1]} : vector<8x128xf32> to vector<8x96xf32>
    %95 = arith.negf %94 : vector<8x96xf32>
    %96 = math.exp %95 : vector<8x96xf32>
    %cst_19 = arith.constant 1.000000e+00 : f32
    %97 = vector.broadcast %cst_19 : f32 to vector<8x96xf32>
    %98 = arith.addf %97, %96 : vector<8x96xf32>
    %99 = arith.divf %97, %98 : vector<8x96xf32>
    %100 = vector.extract_strided_slice %93 {offsets = [0, 96], sizes = [8, 32], strides = [1, 1]} : vector<8x128xf32> to vector<8x32xf32>
    %101 = math.tanh %100 : vector<8x32xf32>
    %102 = vector.extract_strided_slice %99 {offsets = [0, 0], sizes = [8, 32], strides = [1, 1]} : vector<8x96xf32> to vector<8x32xf32>
    %103 = vector.extract_strided_slice %99 {offsets = [0, 32], sizes = [8, 32], strides = [1, 1]} : vector<8x96xf32> to vector<8x32xf32>
    %104 = vector.extract_strided_slice %99 {offsets = [0, 64], sizes = [8, 32], strides = [1, 1]} : vector<8x96xf32> to vector<8x32xf32>
    %105 = arith.mulf %103, %87 : vector<8x32xf32>
    %106 = arith.mulf %102, %101 : vector<8x32xf32>
    %107 = arith.addf %105, %106 : vector<8x32xf32>
    %108 = math.tanh %107 : vector<8x32xf32>
    %109 = arith.mulf %104, %108 : vector<8x32xf32>
    %110 = vector.extract_strided_slice %7 {offsets = [5, 0, 0], sizes = [1, 8, 128], strides = [1, 1, 1]} : vector<8x8x128xf32> to vector<1x8x128xf32>
    %111 = vector.shape_cast %110 : vector<1x8x128xf32> to vector<8x128xf32>
    %cst_20 = arith.constant dense<0.000000e+00> : vector<8x128xf32>
    %112 = tpu.matmul %109, %0, %cst_20 {dimension_numbers = #tpu.dot_dimension_numbers<[1], [0], [0], [1], [0, 0, 1, 1], [], []>} : vector<8x32xf32>, vector<32x128xf32>, vector<8x128xf32> -> vector<8x128xf32>
    %113 = arith.addf %111, %112 : vector<8x128xf32>
    %114 = vector.extract_strided_slice %113 {offsets = [0, 0], sizes = [8, 96], strides = [1, 1]} : vector<8x128xf32> to vector<8x96xf32>
    %115 = arith.negf %114 : vector<8x96xf32>
    %116 = math.exp %115 : vector<8x96xf32>
    %cst_21 = arith.constant 1.000000e+00 : f32
    %117 = vector.broadcast %cst_21 : f32 to vector<8x96xf32>
    %118 = arith.addf %117, %116 : vector<8x96xf32>
    %119 = arith.divf %117, %118 : vector<8x96xf32>
    %120 = vector.extract_strided_slice %113 {offsets = [0, 96], sizes = [8, 32], strides = [1, 1]} : vector<8x128xf32> to vector<8x32xf32>
    %121 = math.tanh %120 : vector<8x32xf32>
    %122 = vector.extract_strided_slice %119 {offsets = [0, 0], sizes = [8, 32], strides = [1, 1]} : vector<8x96xf32> to vector<8x32xf32>
    %123 = vector.extract_strided_slice %119 {offsets = [0, 32], sizes = [8, 32], strides = [1, 1]} : vector<8x96xf32> to vector<8x32xf32>
    %124 = vector.extract_strided_slice %119 {offsets = [0, 64], sizes = [8, 32], strides = [1, 1]} : vector<8x96xf32> to vector<8x32xf32>
    %125 = arith.mulf %123, %107 : vector<8x32xf32>
    %126 = arith.mulf %122, %121 : vector<8x32xf32>
    %127 = arith.addf %125, %126 : vector<8x32xf32>
    %128 = math.tanh %127 : vector<8x32xf32>
    %129 = arith.mulf %124, %128 : vector<8x32xf32>
    %130 = vector.extract_strided_slice %7 {offsets = [6, 0, 0], sizes = [1, 8, 128], strides = [1, 1, 1]} : vector<8x8x128xf32> to vector<1x8x128xf32>
    %131 = vector.shape_cast %130 : vector<1x8x128xf32> to vector<8x128xf32>
    %cst_22 = arith.constant dense<0.000000e+00> : vector<8x128xf32>
    %132 = tpu.matmul %129, %0, %cst_22 {dimension_numbers = #tpu.dot_dimension_numbers<[1], [0], [0], [1], [0, 0, 1, 1], [], []>} : vector<8x32xf32>, vector<32x128xf32>, vector<8x128xf32> -> vector<8x128xf32>
    %133 = arith.addf %131, %132 : vector<8x128xf32>
    %134 = vector.extract_strided_slice %133 {offsets = [0, 0], sizes = [8, 96], strides = [1, 1]} : vector<8x128xf32> to vector<8x96xf32>
    %135 = arith.negf %134 : vector<8x96xf32>
    %136 = math.exp %135 : vector<8x96xf32>
    %cst_23 = arith.constant 1.000000e+00 : f32
    %137 = vector.broadcast %cst_23 : f32 to vector<8x96xf32>
    %138 = arith.addf %137, %136 : vector<8x96xf32>
    %139 = arith.divf %137, %138 : vector<8x96xf32>
    %140 = vector.extract_strided_slice %133 {offsets = [0, 96], sizes = [8, 32], strides = [1, 1]} : vector<8x128xf32> to vector<8x32xf32>
    %141 = math.tanh %140 : vector<8x32xf32>
    %142 = vector.extract_strided_slice %139 {offsets = [0, 0], sizes = [8, 32], strides = [1, 1]} : vector<8x96xf32> to vector<8x32xf32>
    %143 = vector.extract_strided_slice %139 {offsets = [0, 32], sizes = [8, 32], strides = [1, 1]} : vector<8x96xf32> to vector<8x32xf32>
    %144 = vector.extract_strided_slice %139 {offsets = [0, 64], sizes = [8, 32], strides = [1, 1]} : vector<8x96xf32> to vector<8x32xf32>
    %145 = arith.mulf %143, %127 : vector<8x32xf32>
    %146 = arith.mulf %142, %141 : vector<8x32xf32>
    %147 = arith.addf %145, %146 : vector<8x32xf32>
    %148 = math.tanh %147 : vector<8x32xf32>
    %149 = arith.mulf %144, %148 : vector<8x32xf32>
    %150 = vector.extract_strided_slice %7 {offsets = [7, 0, 0], sizes = [1, 8, 128], strides = [1, 1, 1]} : vector<8x8x128xf32> to vector<1x8x128xf32>
    %151 = vector.shape_cast %150 : vector<1x8x128xf32> to vector<8x128xf32>
    %cst_24 = arith.constant dense<0.000000e+00> : vector<8x128xf32>
    %152 = tpu.matmul %149, %0, %cst_24 {dimension_numbers = #tpu.dot_dimension_numbers<[1], [0], [0], [1], [0, 0, 1, 1], [], []>} : vector<8x32xf32>, vector<32x128xf32>, vector<8x128xf32> -> vector<8x128xf32>
    %153 = arith.addf %151, %152 : vector<8x128xf32>
    %154 = vector.extract_strided_slice %153 {offsets = [0, 0], sizes = [8, 96], strides = [1, 1]} : vector<8x128xf32> to vector<8x96xf32>
    %155 = arith.negf %154 : vector<8x96xf32>
    %156 = math.exp %155 : vector<8x96xf32>
    %cst_25 = arith.constant 1.000000e+00 : f32
    %157 = vector.broadcast %cst_25 : f32 to vector<8x96xf32>
    %158 = arith.addf %157, %156 : vector<8x96xf32>
    %159 = arith.divf %157, %158 : vector<8x96xf32>
    %160 = vector.extract_strided_slice %153 {offsets = [0, 96], sizes = [8, 32], strides = [1, 1]} : vector<8x128xf32> to vector<8x32xf32>
    %161 = math.tanh %160 : vector<8x32xf32>
    %162 = vector.extract_strided_slice %159 {offsets = [0, 0], sizes = [8, 32], strides = [1, 1]} : vector<8x96xf32> to vector<8x32xf32>
    %163 = vector.extract_strided_slice %159 {offsets = [0, 32], sizes = [8, 32], strides = [1, 1]} : vector<8x96xf32> to vector<8x32xf32>
    %164 = vector.extract_strided_slice %159 {offsets = [0, 64], sizes = [8, 32], strides = [1, 1]} : vector<8x96xf32> to vector<8x32xf32>
    %165 = arith.mulf %163, %147 : vector<8x32xf32>
    %166 = arith.mulf %162, %161 : vector<8x32xf32>
    %167 = arith.addf %165, %166 : vector<8x32xf32>
    %168 = math.tanh %167 : vector<8x32xf32>
    %169 = arith.mulf %164, %168 : vector<8x32xf32>
    %c0_26 = arith.constant 0 : index
    %c0_27 = arith.constant 0 : index
    %170 = vector.load %arg4[%c0_26, %c0_27] : memref<32x128xf32, #tpu.memory_space<vmem>>, vector<32x128xf32>
    %cst_28 = arith.constant dense<0.000000e+00> : vector<8x128xf32>
    %171 = tpu.matmul %169, %170, %cst_28 {dimension_numbers = #tpu.dot_dimension_numbers<[1], [0], [0], [1], [0, 0, 1, 1], [], []>} : vector<8x32xf32>, vector<32x128xf32>, vector<8x128xf32> -> vector<8x128xf32>
    %c0_29 = arith.constant 0 : index
    %c0_30 = arith.constant 0 : index
    %172 = vector.load %arg5[%c0_29, %c0_30] : memref<1x128xf32, #tpu.memory_space<vmem>>, vector<1x128xf32>
    %173 = vector.broadcast %172 : vector<1x128xf32> to vector<8x128xf32>
    %174 = arith.addf %171, %173 : vector<8x128xf32>
    %c0_31 = arith.constant 0 : index
    %c0_32 = arith.constant 0 : index
    %175 = vector.load %arg6[%c0_31, %c0_32] : memref<8x128xf32, #tpu.memory_space<vmem>>, vector<8x128xf32>
    tpu.vector_store %arg6[%c0_31, %c0_32], %174 {strides = array<i32>} : memref<8x128xf32, #tpu.memory_space<vmem>>, vector<8x128xf32>,
    return
  }
}

</mosaic_0001>

<bundles_post_ra>
// kernel: tpu_custom_call.1
= control target key start
LH: loop header
LB: loop body
LE: loop exit
PB: predicated region body
PF: predicated region fallthrough
CT: control target
= control target key end

     0   :  { %vm69_vm0 = vcmask 1043456   ;;  %vm44_vm1 = vcmask 31744   ;;  %v1363_v2 = vmov 0.0   ;;  %s1628_s0 = inlined_call_operand.vmem [shape: f32[8,8,4], index: 0, kind: input, shape index: {}]   ;;  %s1629_s1 = inlined_call_operand.vmem [shape: f32[4,128], index: 1, kind: input, shape index: {}]   ;;  %s1630_s2 = inlined_call_operand.vmem [shape: f32[32,128], index: 2, kind: input, shape index: {}]   ;;  %s1631_s3 = inlined_call_operand.vmem [shape: f32[1,128], index: 3, kind: input, shape index: {}]   ;;  %s1632_s4 = inlined_call_operand.vmem [shape: f32[32,128], index: 4, kind: input, shape index: {}]   ;;  %s1633_s5 = inlined_call_operand.vmem [shape: f32[1,128], index: 5, kind: input, shape index: {}]   ;;  %s1634_s6 = inlined_call_operand.hbm [shape: f32[8,128], index: 6, kind: output, shape index: {}]  }
   0x1   :  { %v36_v0 = vld [vmem:[%s1629_s1] sm:$0xf]  ;;  %1173 = vmatprep.subr.mxu1 %v1363_v2  ;;  %v1413_v3 = vld [vmem:[%s1630_s2 + $0x18] sm:$0xff]  ;;  %v29_v4 = vld [vmem:[%s1628_s0 + $0x8] sm:$0xff] }
   0x2   :  { %v28_v1 = vld [vmem:[%s1628_s0] sm:$0xff]  ;;  %1159 = vmatprep.subr.msk.mxu0 %vm69_vm0, %v36_v0  ;;  %v1422_v5 = vld [vmem:[%s1630_s2 + $0x10] sm:$0xff] }
   0x3   :  { %1160 = vmatpush3.msk.msra.mxu0 %vm69_vm0, %v36_v0  ;;  %1161 = vmatprep.mubr.msk.f32.mxu0 %vm44_vm1, %v28_v1 }
   0x4   :  { %11 = vsyncpa [#allocation3], 0  ;;  %1174 = vmatpush3.msra.mxu1 %v1413_v3  ;;  %1162 = vmatmul.mubr.msk.f32.vlgmr.msra.gmra.mxu0 %vm44_vm1, %v29_v4  ;;  %v1430_v6 = vld [vmem:[%s1630_s2 + $0x8] sm:$0xff]  ;;  %vm1364_vm2 = vmmov 0   ;;  %v1440_v7 = vld [vmem:[%s1630_s2] sm:$0xff]  ;;  %s1365_s11 = smov 32  }
   0x5   :  { %1175 = vmatprep.subr.mxu1 %v1363_v2  ;;  %1181 = vmatprep.mubr.msk.f32.mxu1 %vm1364_vm2, %v1363_v2  ;;  %v1468_v9 = vld [vmem:[%s1631_s3] ss:$0 sm:$0xff]  ;;  %s1366_s3 = smov 64   ;;  %vm178_vm3 = vcmask 261120   ;;  %v30_v43 = vld [vmem:[%s1628_s0 + $0x10] sm:$0xff]  ;;  %v31_v44 = vld [vmem:[%s1628_s0 + $0x18] sm:$0xff] }
   0x6   :  { %1176 = vmatpush3.msra.mxu1 %v1422_v5  ;;  %1195 = vmatprep.subr.mxu0 %v1363_v2  ;;  %v32_v45 = vld [vmem:[%s1628_s0 + $0x20] sm:$0xff]  ;;  %v33_v46 = vld [vmem:[%s1628_s0 + $0x28] sm:$0xff]  ;;  %v34_v47 = vld [vmem:[%s1628_s0 + $0x30] sm:$0xff]  ;;  %s1367_s8 = smov [#allocation2]  }
   0x7   :  { %1177 = vmatprep.subr.mxu1 %v1363_v2  ;;  %1196 = vmatpush3.msra.mxu0 %v1413_v3  ;;  %v35_v48 = vld [vmem:[%s1628_s0 + $0x38] sm:$0xff] }
   0x8   :  { %1178 = vmatpush3.msra.mxu1 %v1430_v6  ;;  %1197 = vmatprep.subr.mxu0 %v1363_v2 }
   0x9   :  { %1179 = vmatprep.subr.mxu1 %v1363_v2  ;;  %1198 = vmatpush3.msra.mxu0 %v1422_v5 }
   0xa   :  { %1180 = vmatpush3.msra.mxu1 %v1440_v7  ;;  %1199 = vmatprep.subr.mxu0 %v1363_v2 }
   0xb   :  { %1182 = vmatmul.mubr.f32.vlgmr.msra.gmra.mxu1 %v1363_v2  ;;  %1184 = vmatprep.subr.mxu1 %v1363_v2 }
   0xc   :  { %1185 = vmatpush3.msra.mxu1 %v1413_v3  ;;  %1192 = vmatprep.mubr.msk.f32.mxu1 %vm1364_vm2, %v1363_v2 }
   0xd   :  { %1186 = vmatprep.subr.mxu1 %v1363_v2  ;;  %1200 = vmatpush3.msra.mxu0 %v1430_v6 }
   0xe   :  { %1187 = vmatpush3.msra.mxu1 %v1422_v5  ;;  %1201 = vmatprep.subr.mxu0 %v1363_v2 }
   0xf   :  { %1188 = vmatprep.subr.mxu1 %v1363_v2  ;;  %1202 = vmatpush3.msra.mxu0 %v1440_v7 }
  0x10   :  { %1189 = vmatpush3.msra.mxu1 %v1430_v6  ;;  %1217 = vmatprep.subr.mxu0 %v1363_v2 }
  0x11   :  { %1190 = vmatprep.subr.mxu1 %v1363_v2  ;;  %1164 = vmatprep.mubr.msk.f32.mxu0 %vm44_vm1, %v30_v43 }
  0x12   :  { %1191 = vmatpush3.msra.mxu1 %v1440_v7  ;;  %1165 = vmatmul.mubr.msk.f32.gmra.mxu0 %vm44_vm1, %v31_v44 }
  0x13   :  { %1206 = vmatprep.subr.mxu1 %v1363_v2  ;;  %1167 = vmatprep.mubr.msk.f32.mxu0 %vm44_vm1, %v32_v45 }
  0x16   :  { %1168 = vmatmul.mubr.msk.f32.gmra.mxu0 %vm44_vm1, %v33_v46 }
  0x17   :  { %1170 = vmatprep.mubr.msk.f32.mxu0 %vm44_vm1, %v34_v47 }
  0x1a   :  { %1171 = vmatmul.mubr.msk.f32.gmra.mxu0 %vm44_vm1, %v35_v48 }
  0x1b   :  { %1203 = vmatprep.mubr.msk.f32.mxu0 %vm1364_vm2, %v1363_v2 }
  0xc4   :  { %v1163_v8 = vpop.f32.mrf.mxu0 }
  0xc5   :  { %v145_v29 = vadd.f32 %v1163_v8, %v1468_v9 }
  0xc6   :  { %v139_v10 = vpop.f32.mrf.mxu0 }
  0xc7   :  { %v140_v11 = vadd.f32 %v1468_v9, %v139_v10 }
  0xcb   :  { %v248_v12 = vpop.f32.mrf.mxu1 }
  0xcc   :  { %v252_v13 = vadd.f32 %v248_v12, %v140_v11 }
  0xcd   :  { %v1183_v14 = vpop.f32.mrf.mxu1 }
  0xce   :  { %1277 = vtanh.f32 %v252_v13  ;;  %v1088_v16 = vmul.f32 -1.442695, %v252_v13 }
  0xd0   :  { %1279 = vpow2.f32 %v1088_v16 }
  0xd2   :  { %v1166_v53 = vpop.f32.mrf.mxu0 }
  0xd4   :  { %v149_v54 = vpop.f32.mrf.mxu0 }
  0xd5   :  { %v150_v59 = vadd.f32 %v1468_v9, %v149_v54 }
  0xd6   :  { %v1528_v55 = vpop.f32.mrf.mxu0 }
  0xd8   :  { %v1530_v56 = vpop.f32.mrf.mxu0 }
  0xda   :  { %v1532_v57 = vpop.f32.mrf.mxu0 }
  0xdb   :  { %v1278_v15 = vpop.eup %1277 }
  0xdc   :  { %262 = vrot.lane.b32.xlu0 %v1278_v15, %s1365_s11  ;;  %v1534_v58 = vpop.f32.mrf.mxu0 }
  0xdd   :  { %v1280_v17 = vpop.eup %1279 }
  0xde   :  { %v256_v18 = vadd.f32 1.0, %v1280_v17 }
  0xe0   :  { %1281 = vrcp.f32 %v256_v18 }
  0xed   :  { %v1282_v19 = vpop.eup %1281 }
  0xee   :  { %v260_v22 = vmul.f32 0.0, %v1282_v19 }
 0x14e   :  { %v263_v20 = vpop.permute.xlu0 %262 }
 0x14f   :  { %v265_v21 = vmul.f32 %v1282_v19, %v263_v20 }
 0x151   :  { %267 = vrot.lane.b32.xlu0 %v265_v21, %s1365_s11 }
 0x1c3   :  { %v268_v23 = vpop.permute.xlu0 %267 }
 0x1c4   :  { %v270_v24 = vadd.f32 %v268_v23, %v260_v22 }
 0x1c6   :  { %1283 = vtanh.f32 %v270_v24 }
 0x1d3   :  { %v1284_v25 = vpop.eup %1283 }
 0x1d4   :  { %273 = vrot.lane.b32.xlu1 %v1284_v25, %s1365_s11 }
 0x246   :  { %v274_v26 = vpop.permute.xlu1 %273 }
 0x247   :  { %v276_v27 = vmul.f32 %v1282_v19, %v274_v26  ;;  %v155_v19 = vadd.f32 %v1166_v53, %v1468_v9 }
 0x249   :  { %278 = vrot.lane.b32.xlu1 %v276_v27, %s1366_s3 }
 0x2bb   :  { %v279_v28 = vpop.permute.xlu1 %278 }
 0x2bc   :  { %1193 = vmatmul.mubr.msk.f32.vlgmr.msra.gmra.mxu1 %vm178_vm3, %v279_v28 }
 0x2bd   :  { %1207 = vmatpush3.msra.mxu1 %v1413_v3  ;;  %1214 = vmatprep.mubr.msk.f32.mxu1 %vm1364_vm2, %v1363_v2 }
 0x2be   :  { %1208 = vmatprep.subr.mxu1 %v1363_v2 }
 0x2bf   :  { %1209 = vmatpush3.msra.mxu1 %v1422_v5 }
 0x2c0   :  { %1210 = vmatprep.subr.mxu1 %v1363_v2 }
 0x2c1   :  { %1211 = vmatpush3.msra.mxu1 %v1430_v6 }
 0x2c2   :  { %1212 = vmatprep.subr.mxu1 %v1363_v2 }
 0x2c3   :  { %1213 = vmatpush3.msra.mxu1 %v1440_v7 }
 0x2c4   :  { %1228 = vmatprep.subr.mxu1 %v1363_v2 }
 0x37c   :  { %v348_v30 = vpop.f32.mrf.mxu1 }
 0x37d   :  { %v352_v31 = vadd.f32 %v348_v30, %v145_v29 }
 0x37e   :  { %v1194_v32 = vpop.f32.mrf.mxu1 }
 0x37f   :  { %1285 = vtanh.f32 %v352_v31  ;;  %v1090_v34 = vmul.f32 -1.442695, %v352_v31 }
 0x381   :  { %1287 = vpow2.f32 %v1090_v34 }
 0x38c   :  { %v1286_v33 = vpop.eup %1285 }
 0x38d   :  { %362 = vrot.lane.b32.xlu0 %v1286_v33, %s1365_s11 }
 0x38e   :  { %v1288_v35 = vpop.eup %1287 }
 0x38f   :  { %v356_v36 = vadd.f32 1.0, %v1288_v35 }
 0x391   :  { %1289 = vrcp.f32 %v356_v36 }
 0x39e   :  { %v1290_v37 = vpop.eup %1289 }
 0x39f   :  { %v360_v40 = vmul.f32 %v1290_v37, %v270_v24 }
 0x3ff   :  { %v363_v38 = vpop.permute.xlu0 %362 }
 0x400   :  { %v365_v39 = vmul.f32 %v1290_v37, %v363_v38 }
 0x402   :  { %367 = vrot.lane.b32.xlu1 %v365_v39, %s1365_s11 }
 0x474   :  { %v368_v41 = vpop.permute.xlu1 %367 }
 0x475   :  { %v370_v42 = vadd.f32 %v368_v41, %v360_v40 }
 0x477   :  { %1291 = vtanh.f32 %v370_v42 }
 0x484   :  { %v1292_v49 = vpop.eup %1291 }
 0x485   :  { %373 = vrot.lane.b32.xlu0 %v1292_v49, %s1365_s11 }
 0x4f7   :  { %v374_v50 = vpop.permute.xlu0 %373 }
 0x4f8   :  { %v376_v51 = vmul.f32 %v1290_v37, %v374_v50  ;;  %v160_v37 = vadd.f32 %v1468_v9, %v1530_v56  ;;  %v165_v56 = vadd.f32 %v1528_v55, %v1468_v9 }
 0x4fa   :  { %378 = vrot.lane.b32.xlu1 %v376_v51, %s1366_s3 }
 0x56c   :  { %v379_v52 = vpop.permute.xlu1 %378 }
 0x56d   :  { %1204 = vmatmul.mubr.msk.f32.vlgmr.msra.gmra.mxu0 %vm178_vm3, %v379_v52 }
 0x56e   :  { %1218 = vmatpush3.msra.mxu0 %v1413_v3  ;;  %1225 = vmatprep.mubr.msk.f32.mxu0 %vm1364_vm2, %v1363_v2 }
 0x56f   :  { %1219 = vmatprep.subr.mxu0 %v1363_v2 }
 0x570   :  { %1220 = vmatpush3.msra.mxu0 %v1422_v5 }
 0x571   :  { %1221 = vmatprep.subr.mxu0 %v1363_v2 }
 0x572   :  { %1222 = vmatpush3.msra.mxu0 %v1430_v6 }
 0x573   :  { %1223 = vmatprep.subr.mxu0 %v1363_v2 }
 0x574   :  { %1224 = vmatpush3.msra.mxu0 %v1440_v7 }
 0x575   :  { %1239 = vmatprep.subr.mxu0 %v1363_v2 }
 0x62d   :  { %v448_v60 = vpop.f32.mrf.mxu0 }
 0x62e   :  { %v452_v61 = vadd.f32 %v448_v60, %v150_v59 }
 0x62f   :  { %v1205_v62 = vpop.f32.mrf.mxu0 }
 0x630   :  { %1293 = vtanh.f32 %v452_v61  ;;  %v1092_v0 = vmul.f32 -1.442695, %v452_v61 }
 0x632   :  { %1295 = vpow2.f32 %v1092_v0 }
 0x63d   :  { %v1294_v63 = vpop.eup %1293 }
 0x63e   :  { %462 = vrot.lane.b32.xlu0 %v1294_v63, %s1365_s11 }
 0x63f   :  { %v1296_v1 = vpop.eup %1295 }
 0x640   :  { %v456_v4 = vadd.f32 1.0, %v1296_v1 }
 0x642   :  { %1297 = vrcp.f32 %v456_v4 }
 0x64f   :  { %v1298_v8 = vpop.eup %1297 }
 0x650   :  { %v460_v12 = vmul.f32 %v1298_v8, %v370_v42 }
 0x6b0   :  { %v463_v10 = vpop.permute.xlu0 %462 }
 0x6b1   :  { %v465_v11 = vmul.f32 %v1298_v8, %v463_v10 }
 0x6b3   :  { %467 = vrot.lane.b32.xlu1 %v465_v11, %s1365_s11 }
 0x725   :  { %v468_v13 = vpop.permute.xlu1 %467 }
 0x726   :  { %v470_v14 = vadd.f32 %v468_v13, %v460_v12  ;;  %v170_v13 = vadd.f32 %v1468_v9, %v1534_v58 }
 0x728   :  { %1299 = vtanh.f32 %v470_v14 }
 0x735   :  { %v1300_v15 = vpop.eup %1299 }
 0x736   :  { %473 = vrot.lane.b32.xlu0 %v1300_v15, %s1365_s11 }
 0x7a8   :  { %v474_v16 = vpop.permute.xlu0 %473 }
 0x7a9   :  { %v476_v17 = vmul.f32 %v1298_v8, %v474_v16 }
 0x7ab   :  { %478 = vrot.lane.b32.xlu1 %v476_v17, %s1366_s3 }
 0x81d   :  { %v479_v18 = vpop.permute.xlu1 %478 }
 0x81e   :  { %1215 = vmatmul.mubr.msk.f32.vlgmr.msra.gmra.mxu1 %vm178_vm3, %v479_v18 }
 0x81f   :  { %1229 = vmatpush3.msra.mxu1 %v1413_v3  ;;  %1236 = vmatprep.mubr.msk.f32.mxu1 %vm1364_vm2, %v1363_v2 }
 0x820   :  { %1230 = vmatprep.subr.mxu1 %v1363_v2 }
 0x821   :  { %1231 = vmatpush3.msra.mxu1 %v1422_v5 }
 0x822   :  { %1232 = vmatprep.subr.mxu1 %v1363_v2 }
 0x823   :  { %1233 = vmatpush3.msra.mxu1 %v1430_v6 }
 0x824   :  { %1234 = vmatprep.subr.mxu1 %v1363_v2 }
 0x825   :  { %1235 = vmatpush3.msra.mxu1 %v1440_v7 }
 0x826   :  { %1250 = vmatprep.subr.mxu1 %v1363_v2 }
 0x8de   :  { %v548_v20 = vpop.f32.mrf.mxu1 }
 0x8df   :  { %v552_v21 = vadd.f32 %v548_v20, %v155_v19 }
 0x8e0   :  { %v1216_v22 = vpop.f32.mrf.mxu1 }
 0x8e1   :  { %1301 = vtanh.f32 %v552_v21  ;;  %v1094_v24 = vmul.f32 -1.442695, %v552_v21 }
 0x8e3   :  { %1303 = vpow2.f32 %v1094_v24 }
 0x8ee   :  { %v1302_v23 = vpop.eup %1301 }
 0x8ef   :  { %562 = vrot.lane.b32.xlu0 %v1302_v23, %s1365_s11 }
 0x8f0   :  { %v1304_v25 = vpop.eup %1303 }
 0x8f1   :  { %v556_v26 = vadd.f32 1.0, %v1304_v25 }
 0x8f3   :  { %1305 = vrcp.f32 %v556_v26 }
 0x900   :  { %v1306_v27 = vpop.eup %1305 }
 0x901   :  { %v560_v30 = vmul.f32 %v1306_v27, %v470_v14 }
 0x961   :  { %v563_v28 = vpop.permute.xlu0 %562 }
 0x962   :  { %v565_v29 = vmul.f32 %v1306_v27, %v563_v28 }
 0x964   :  { %567 = vrot.lane.b32.xlu1 %v565_v29, %s1365_s11 }
 0x9d6   :  { %v568_v31 = vpop.permute.xlu1 %567 }
 0x9d7   :  { %v570_v32 = vadd.f32 %v568_v31, %v560_v30  ;;  %v175_v30 = vadd.f32 %v1532_v57, %v1468_v9  ;;  %v980_v57 = vld [vmem:[%s1632_s4 + $0x18] sm:$0xff] }
 0x9d9   :  { %1307 = vtanh.f32 %v570_v32 }
 0x9e6   :  { %v1308_v33 = vpop.eup %1307 }
 0x9e7   :  { %573 = vrot.lane.b32.xlu0 %v1308_v33, %s1365_s11 }
 0xa59   :  { %v574_v34 = vpop.permute.xlu0 %573 }
 0xa5a   :  { %v576_v35 = vmul.f32 %v1306_v27, %v574_v34 }
 0xa5c   :  { %578 = vrot.lane.b32.xlu1 %v576_v35, %s1366_s3 }
 0xace   :  { %v579_v36 = vpop.permute.xlu1 %578 }
 0xacf   :  { %1226 = vmatmul.mubr.msk.f32.vlgmr.msra.gmra.mxu0 %vm178_vm3, %v579_v36 }
 0xad0   :  { %1240 = vmatpush3.msra.mxu0 %v1413_v3  ;;  %1247 = vmatprep.mubr.msk.f32.mxu0 %vm1364_vm2, %v1363_v2 }
 0xad1   :  { %1241 = vmatprep.subr.mxu0 %v1363_v2 }
 0xad2   :  { %1242 = vmatpush3.msra.mxu0 %v1422_v5 }
 0xad3   :  { %1243 = vmatprep.subr.mxu0 %v1363_v2 }
 0xad4   :  { %1244 = vmatpush3.msra.mxu0 %v1430_v6 }
 0xad5   :  { %1245 = vmatprep.subr.mxu0 %v1363_v2 }
 0xad6   :  { %1246 = vmatpush3.msra.mxu0 %v1440_v7 }
 0xad7   :  { %1261 = vmatprep.subr.mxu0 %v1363_v2 }
 0xb8f   :  { %v648_v38 = vpop.f32.mrf.mxu0 }
 0xb90   :  { %v652_v39 = vadd.f32 %v648_v38, %v160_v37 }
 0xb91   :  { %v1227_v40 = vpop.f32.mrf.mxu0 }
 0xb92   :  { %1309 = vtanh.f32 %v652_v39  ;;  %v1096_v42 = vmul.f32 -1.442695, %v652_v39 }
 0xb94   :  { %1311 = vpow2.f32 %v1096_v42 }
 0xb9f   :  { %v1310_v41 = vpop.eup %1309 }
 0xba0   :  { %662 = vrot.lane.b32.xlu0 %v1310_v41, %s1365_s11 }
 0xba1   :  { %v1312_v43 = vpop.eup %1311 }
 0xba2   :  { %v656_v44 = vadd.f32 1.0, %v1312_v43  ;;  %v979_v43 = vld [vmem:[%s1632_s4 + $0x10] sm:$0xff] }
 0xba4   :  { %1313 = vrcp.f32 %v656_v44  ;;  %v978_v44 = vld [vmem:[%s1632_s4 + $0x8] sm:$0xff] }
 0xbb1   :  { %v1314_v45 = vpop.eup %1313 }
 0xbb2   :  { %v660_v48 = vmul.f32 %v1314_v45, %v570_v32 }
 0xc12   :  { %v663_v46 = vpop.permute.xlu0 %662 }
 0xc13   :  { %v665_v47 = vmul.f32 %v1314_v45, %v663_v46 }
 0xc15   :  { %667 = vrot.lane.b32.xlu1 %v665_v47, %s1365_s11 }
 0xc87   :  { %v668_v49 = vpop.permute.xlu1 %667 }
 0xc88   :  { %v670_v50 = vadd.f32 %v668_v49, %v660_v48 }
 0xc8a   :  { %1315 = vtanh.f32 %v670_v50 }
 0xc97   :  { %v1316_v51 = vpop.eup %1315 }
 0xc98   :  { %673 = vrot.lane.b32.xlu0 %v1316_v51, %s1365_s11 }
 0xd0a   :  { %v674_v52 = vpop.permute.xlu0 %673 }
 0xd0b   :  { %v676_v53 = vmul.f32 %v1314_v45, %v674_v52  ;;  %v977_v45 = vld [vmem:[%s1632_s4] sm:$0xff]  ;;  %s1070_s4 = sshll.u32 %s1367_s8, 4  ;;  %s1071_s4 = int_to_ptr.vmem [resolvable:$true] %s1070_s4 }
 0xd0c   :  { %s1341_s9 = scalar_lea.vmem %s1071_s4, 128  ;;  %p1346_p1 = scmp.lt.s32.totalorder %s1071_s4, %s1071_s4 }
 0xd0d   :  { %678 = vrot.lane.b32.xlu1 %v676_v53, %s1366_s3  ;;  %p1342_p0 = scmp.ne.s32.totalorder %s1071_s4, %s1341_s9  ;;  %p1347_p2 = scmp.lt.s32.totalorder %s1341_s9, %s1341_s9 }
 0xd0f   :  { %p1348_p3 = por %p1347_p2, %p1346_p1 }
 0xd11   :  { %p1349_p4 = pnand %p1348_p3, %p1342_p0 }
 0xd7f   :  { %v679_v54 = vpop.permute.xlu1 %678 }
 0xd80   :  { %1237 = vmatmul.mubr.msk.f32.vlgmr.msra.gmra.mxu1 %vm178_vm3, %v679_v54 }
 0xd81   :  { %1251 = vmatpush3.msra.mxu1 %v1413_v3  ;;  %1258 = vmatprep.mubr.msk.f32.mxu1 %vm1364_vm2, %v1363_v2 }
 0xd82   :  { %1252 = vmatprep.subr.mxu1 %v1363_v2 }
 0xd83   :  { %1253 = vmatpush3.msra.mxu1 %v1422_v5 }
 0xd84   :  { %1254 = vmatprep.subr.mxu1 %v1363_v2 }
 0xd85   :  { %1255 = vmatpush3.msra.mxu1 %v1430_v6 }
 0xd86   :  { %1256 = vmatprep.subr.mxu1 %v1363_v2 }
 0xd87   :  { %1257 = vmatpush3.msra.mxu1 %v1440_v7 }
 0xe40   :  { %v748_v59 = vpop.f32.mrf.mxu1 }
 0xe41   :  { %v752_v3 = vadd.f32 %v748_v59, %v165_v56 }
 0xe42   :  { %v1238_v60 = vpop.f32.mrf.mxu1 }
 0xe43   :  { %1317 = vtanh.f32 %v752_v3  ;;  %v1098_v62 = vmul.f32 -1.442695, %v752_v3 }
 0xe45   :  { %1319 = vpow2.f32 %v1098_v62 }
 0xe50   :  { %v1318_v61 = vpop.eup %1317 }
 0xe51   :  { %762 = vrot.lane.b32.xlu0 %v1318_v61, %s1365_s11 }
 0xe52   :  { %v1320_v5 = vpop.eup %1319 }
 0xe53   :  { %v756_v63 = vadd.f32 1.0, %v1320_v5 }
 0xe55   :  { %1321 = vrcp.f32 %v756_v63 }
 0xe62   :  { %v1322_v6 = vpop.eup %1321 }
 0xe63   :  { %v760_v7 = vmul.f32 %v1322_v6, %v670_v50  ;;  %v1103_v50 = vld [vmem:[%s1633_s5] ss:$0 sm:$0xff] }
 0xec3   :  { %v763_v0 = vpop.permute.xlu0 %762 }
 0xec4   :  { %v765_v1 = vmul.f32 %v1322_v6, %v763_v0 }
 0xec6   :  { %767 = vrot.lane.b32.xlu1 %v765_v1, %s1365_s11 }
 0xf38   :  { %v768_v4 = vpop.permute.xlu1 %767 }
 0xf39   :  { %v770_v55 = vadd.f32 %v768_v4, %v760_v7 }
 0xf3b   :  { %1323 = vtanh.f32 %v770_v55 }
 0xf48   :  { %v1324_v8 = vpop.eup %1323 }
 0xf49   :  { %773 = vrot.lane.b32.xlu0 %v1324_v8, %s1365_s11 }
 0xfbb   :  { %v774_v10 = vpop.permute.xlu0 %773 }
 0xfbc   :  { %v776_v11 = vmul.f32 %v1322_v6, %v774_v10 }
 0xfbe   :  { %778 = vrot.lane.b32.xlu1 %v776_v11, %s1366_s3 }
0x1030   :  { %v779_v12 = vpop.permute.xlu1 %778 }
0x1031   :  { %1248 = vmatmul.mubr.msk.f32.vlgmr.msra.gmra.mxu0 %vm178_vm3, %v779_v12 }
0x1032   :  { %1269 = vmatprep.mubr.msk.f32.mxu0 %vm1364_vm2, %v1363_v2  ;;  %1262 = vmatpush3.msra.mxu0 %v980_v57 }
0x1033   :  { %1263 = vmatprep.subr.mxu0 %v1363_v2 }
0x1034   :  { %1264 = vmatpush3.msra.mxu0 %v979_v43 }
0x1035   :  { %1265 = vmatprep.subr.mxu0 %v1363_v2 }
0x1036   :  { %1266 = vmatpush3.msra.mxu0 %v978_v44 }
0x1037   :  { %1267 = vmatprep.subr.mxu0 %v1363_v2 }
0x1038   :  { %1268 = vmatpush3.msra.mxu0 %v977_v45 }
0x10f1   :  { %v848_v14 = vpop.f32.mrf.mxu0 }
0x10f2   :  { %v852_v15 = vadd.f32 %v848_v14, %v170_v13 }
0x10f3   :  { %v1249_v16 = vpop.f32.mrf.mxu0 }
0x10f4   :  { %1325 = vtanh.f32 %v852_v15  ;;  %v1100_v18 = vmul.f32 -1.442695, %v852_v15 }
0x10f6   :  { %1327 = vpow2.f32 %v1100_v18 }
0x1101   :  { %v1326_v17 = vpop.eup %1325 }
0x1102   :  { %862 = vrot.lane.b32.xlu0 %v1326_v17, %s1365_s11 }
0x1103   :  { %v1328_v19 = vpop.eup %1327 }
0x1104   :  { %v856_v20 = vadd.f32 1.0, %v1328_v19 }
0x1106   :  { %1329 = vrcp.f32 %v856_v20 }
0x1113   :  { %v1330_v21 = vpop.eup %1329 }
0x1114   :  { %v860_v24 = vmul.f32 %v1330_v21, %v770_v55 }
0x1174   :  { %v863_v22 = vpop.permute.xlu0 %862 }
0x1175   :  { %v865_v23 = vmul.f32 %v1330_v21, %v863_v22 }
0x1177   :  { %867 = vrot.lane.b32.xlu1 %v865_v23, %s1365_s11 }
0x11e9   :  { %v868_v25 = vpop.permute.xlu1 %867 }
0x11ea   :  { %v870_v58 = vadd.f32 %v868_v25, %v860_v24 }
0x11ec   :  { %1331 = vtanh.f32 %v870_v58 }
0x11f9   :  { %v1332_v26 = vpop.eup %1331 }
0x11fa   :  { %873 = vrot.lane.b32.xlu0 %v1332_v26, %s1365_s11 }
0x126c   :  { %v874_v27 = vpop.permute.xlu0 %873 }
0x126d   :  { %v876_v28 = vmul.f32 %v1330_v21, %v874_v27 }
0x126f   :  { %878 = vrot.lane.b32.xlu1 %v876_v28, %s1366_s3 }
0x12e1   :  { %v879_v29 = vpop.permute.xlu1 %878 }
0x12e2   :  { %1259 = vmatmul.mubr.msk.f32.vlgmr.msra.gmra.mxu1 %vm178_vm3, %v879_v29 }
0x13a2   :  { %v948_v31 = vpop.f32.mrf.mxu1 }
0x13a3   :  { %v952_v32 = vadd.f32 %v948_v31, %v175_v30 }
0x13a4   :  { %v1260_v33 = vpop.f32.mrf.mxu1 }
0x13a5   :  { %1333 = vtanh.f32 %v952_v32  ;;  %v1102_v35 = vmul.f32 -1.442695, %v952_v32 }
0x13a7   :  { %1335 = vpow2.f32 %v1102_v35 }
0x13b2   :  { %v1334_v34 = vpop.eup %1333 }
0x13b3   :  { %962 = vrot.lane.b32.xlu0 %v1334_v34, %s1365_s11 }
0x13b4   :  { %v1336_v36 = vpop.eup %1335 }
0x13b5   :  { %v956_v37 = vadd.f32 1.0, %v1336_v36 }
0x13b7   :  { %1337 = vrcp.f32 %v956_v37 }
0x13c4   :  { %v1338_v38 = vpop.eup %1337 }
0x13c5   :  { %v960_v41 = vmul.f32 %v1338_v38, %v870_v58 }
0x1425   :  { %v963_v39 = vpop.permute.xlu0 %962 }
0x1426   :  { %v965_v40 = vmul.f32 %v1338_v38, %v963_v39 }
0x1428   :  { %967 = vrot.lane.b32.xlu1 %v965_v40, %s1365_s11 }
0x149a   :  { %v968_v42 = vpop.permute.xlu1 %967 }
0x149b   :  { %v970_v9 = vadd.f32 %v968_v42, %v960_v41 }
0x149d   :  { %1339 = vtanh.f32 %v970_v9 }
0x14aa   :  { %v1340_v46 = vpop.eup %1339 }
0x14ab   :  { %973 = vrot.lane.b32.xlu0 %v1340_v46, %s1365_s11 }
0x151d   :  { %v974_v47 = vpop.permute.xlu0 %973 }
0x151e   :  { %v976_v48 = vmul.f32 %v1338_v38, %v974_v47 }
0x1520   :  { %989 = vrot.lane.b32.xlu1 %v976_v48, %s1366_s3 }
0x1592   :  { %v990_v49 = vpop.permute.xlu1 %989 }
0x1593   :  { %1270 = vmatmul.mubr.msk.f32.vlgmr.msra.gmra.mxu0 %vm178_vm3, %v990_v49 }
0x1653   :  { %v1059_v51 = vpop.f32.mrf.mxu0 }
0x1654   :  { %v1060_v52 = vadd.f32 %v1103_v50, %v1059_v51 }
0x1655   :  { %v1271_v2 = vpop.f32.mrf.mxu0 }
0x1656   :  { %1063 = vst [vmem:[#allocation2] sm:$0xff] %v1060_v52 }
0x1657   :  { %1352 = shalt.err (!%p1349_p4)
}
0x1658   :  { %1073 = dma.vmem_to_hbm [thread:$0]  %s1071_s4, 128, %s1634_s6, [#allocation3]  }
0x1659   :  { %1361 = dma.done.wait [#allocation3], 128  }
0x165a   :  { %1362 = vsyncadd [#allocation3], 4294967168 }
0x165b   :  { %1077 = vsyncpa [#allocation3], 1 }

</bundles_post_ra>
